<compile_context>
chip_gen: v6e
topology: v6e:2x2x1
jax: 0.10.0
libtpu: 0.0.40
codegen_flags: <defaults>
</compile_context>

<pallas_src>
import jax
import jax.numpy as jnp
from jax import lax
from jax.experimental import pallas as pl
from jax.experimental.pallas import tpu as pltpu


# Contract dim 1 of lhs with dim 1 of rhs: (M, K) x (N, K) -> (M, N).
_CONTRACT_LAST = (((1,), (1,)), ((), ()))


def _round_up(x, m):
    return (x + m - 1) // m * m


def _mlp_kernel(x_ref, w1_ref, w2_ref, o_ref, h_ref):
    # linear1: (TB, in) . (hidden, in) -> (TB, hidden); f32 accumulation on MXU.
    h_ref[...] = lax.dot_general(
        x_ref[...], w1_ref[...],
        dimension_numbers=_CONTRACT_LAST,
        preferred_element_type=jnp.float32,
    )
    # linear2: (TB, hidden) . (out_p, hidden) -> (TB, out_p); streams h from VMEM.
    o = lax.dot_general(
        h_ref[...], w2_ref[...],
        dimension_numbers=_CONTRACT_LAST,
        preferred_element_type=jnp.float32,
    )
    o_ref[...] = o.astype(o_ref.dtype)


@jax.jit
def simple_linear_model(x, w1, w2):
    """Forward pass of SimpleLinearModel.

    x  : (B, input_dim)            float32
    w1 : (hidden_dim, input_dim)   float32  (PyTorch linear1.weight layout)
    w2 : (output_dim, hidden_dim)  float32  (PyTorch linear2.weight layout)
    returns (B, output_dim) float32
    """
    B, input_dim = x.shape
    hidden_dim = w1.shape[0]
    output_dim = w2.shape[0]
    itemsize = jnp.dtype(x.dtype).itemsize

    # --- batch tiling ------------------------------------------------------
    # TB >= 128-class tiles once the batch is big enough; for small batches a
    # single sublane-aligned block (no wasted padding rows).
    if B <= 256:
        tb = _round_up(B, 8)
    else:
        tb = 256
    n_b = pl.cdiv(B, tb)
    b_pad = n_b * tb

    # --- lane-dense output -------------------------------------------------
    out_pad = _round_up(output_dim, 128)

    x_p = x if b_pad == B else jnp.pad(x, ((0, b_pad - B), (0, 0)))
    w2_p = w2 if out_pad == output_dim else jnp.pad(
        w2, ((0, out_pad - output_dim), (0, 0)))

    # --- VMEM budget (sized so it also fits v7x's 64 MiB physical VMEM) ----
    vmem_bytes = itemsize * (
        hidden_dim * input_dim + out_pad * hidden_dim      # resident weights
        + 2 * tb * input_dim + 2 * tb * out_pad            # double-buffered x/out
        + tb * hidden_dim                                  # h scratch (f32)
    )
    vmem_limit = int(min(max(2 * vmem_bytes, 32 * 1024 * 1024),
                         64 * 1024 * 1024))

    flops = 2 * b_pad * input_dim * hidden_dim + 2 * b_pad * hidden_dim * out_pad
    bytes_accessed = itemsize * (
        b_pad * input_dim + hidden_dim * input_dim
        + out_pad * hidden_dim + b_pad * out_pad
    )

    out_padded = pl.pallas_call(
        _mlp_kernel,
        out_shape=jax.ShapeDtypeStruct((b_pad, out_pad), x.dtype),
        grid_spec=pltpu.PrefetchScalarGridSpec(
            num_scalar_prefetch=0,
            grid=(n_b,),
            in_specs=[
                # x: tiled along batch.
                pl.BlockSpec((tb, input_dim), lambda i: (i, 0)),
                # weights: whole arrays, constant index map -> VMEM-resident.
                pl.BlockSpec((hidden_dim, input_dim), lambda i: (0, 0)),
                pl.BlockSpec((out_pad, hidden_dim), lambda i: (0, 0)),
            ],
            out_specs=pl.BlockSpec((tb, out_pad), lambda i: (i, 0)),
            scratch_shapes=[pltpu.VMEM((tb, hidden_dim), jnp.float32)],
        ),
        compiler_params=pltpu.CompilerParams(
            dimension_semantics=("parallel",),
            vmem_limit_bytes=vmem_limit,
        ),
        cost_estimate=pl.CostEstimate(
            flops=flops, transcendentals=0, bytes_accessed=bytes_accessed),
    )(x_p, w1, w2_p)

    return out_padded[:B, :output_dim]


def kaiming_normal(key, out_features, in_features, mode="fan_out"):
    # PyTorch kaiming_normal_ with nonlinearity='relu': std = sqrt(2 / fan)
    fan = out_features if mode == "fan_out" else in_features
    std = (2.0 / fan) ** 0.5
    return std * jax.random.normal(key, (out_features, in_features), dtype=jnp.float32)


if __name__ == "__main__":
    # Small shapes consistent with the module: batch=8, input_dim=16,
    # hidden_dim=32 (default), output_dim=8.
    batch, input_dim, hidden_dim, output_dim = 8, 16, 32, 8

    key = jax.random.PRNGKey(0)
    kx, k1, k2 = jax.random.split(key, 3)

    x = jax.random.normal(kx, (batch, input_dim), dtype=jnp.float32)
    w1 = kaiming_normal(k1, hidden_dim, input_dim, mode="fan_out")   # linear1.weight
    w2 = kaiming_normal(k2, output_dim, hidden_dim, mode="fan_out")  # linear2.weight

    out = simple_linear_model(x, w1, w2)
    out = jax.block_until_ready(out)

    # Sanity check against plain-JAX reference of the PyTorch forward.
    ref = (x @ w1.T) @ w2.T
    assert out.shape == (batch, output_dim)
    assert jnp.allclose(out, ref, atol=1e-5, rtol=1e-5), "mismatch vs reference"

    print("KERNEL_OK")
</pallas_src>

<mosaic_0001>
module attributes {stable_mosaic.version = 11 : i64} {
  func.func @_mlp_kernel(%arg0: i32, %arg1: memref<8x16xf32, #tpu.memory_space<vmem>>, %arg2: memref<32x16xf32, #tpu.memory_space<vmem>>, %arg3: memref<128x32xf32, #tpu.memory_space<vmem>>, %arg4: memref<8x128xf32, #tpu.memory_space<vmem>>, %arg5: memref<8x32xf32, #tpu.memory_space<vmem>>) attributes {dimension_semantics = [#tpu.dimension_semantics<parallel>], iteration_bounds = array<i64: 1>, scalar_prefetch = 0 : i64, scratch_operands = 1 : i64, tpu.core_type = #tpu.core_type<tc>, window_params = [{transform_indices = @transform_0, window_bounds = array<i64: 8, 16>}, {pipeline_mode = #tpu.pipeline_mode<synchronous>, transform_indices = @transform_1, window_bounds = array<i64: 32, 16>}, {pipeline_mode = #tpu.pipeline_mode<synchronous>, transform_indices = @transform_2, window_bounds = array<i64: 128, 32>}, {transform_indices = @transform_3, window_bounds = array<i64: 8, 128>}]} {
    %c0 = arith.constant 0 : index
    %c0_0 = arith.constant 0 : index
    %0 = vector.load %arg1[%c0, %c0_0] : memref<8x16xf32, #tpu.memory_space<vmem>>, vector<8x16xf32>
    %c0_1 = arith.constant 0 : index
    %c0_2 = arith.constant 0 : index
    %1 = vector.load %arg2[%c0_1, %c0_2] : memref<32x16xf32, #tpu.memory_space<vmem>>, vector<32x16xf32>
    %cst = arith.constant dense<0.000000e+00> : vector<8x32xf32>
    %2 = tpu.matmul %0, %1, %cst {dimension_numbers = #tpu.dot_dimension_numbers<[1], [1], [0], [0], [0, 0, 1, 0], [], []>} : vector<8x16xf32>, vector<32x16xf32>, vector<8x32xf32> -> vector<8x32xf32>
    %c0_3 = arith.constant 0 : index
    %c0_4 = arith.constant 0 : index
    %3 = vector.load %arg5[%c0_3, %c0_4] : memref<8x32xf32, #tpu.memory_space<vmem>>, vector<8x32xf32>
    tpu.vector_store %arg5[%c0_3, %c0_4], %2 {strides = array<i32>} : memref<8x32xf32, #tpu.memory_space<vmem>>, vector<8x32xf32>,
    %c0_5 = arith.constant 0 : index
    %c0_6 = arith.constant 0 : index
    %4 = vector.load %arg5[%c0_5, %c0_6] : memref<8x32xf32, #tpu.memory_space<vmem>>, vector<8x32xf32>
    %c0_7 = arith.constant 0 : index
    %c0_8 = arith.constant 0 : index
    %5 = vector.load %arg3[%c0_7, %c0_8] : memref<128x32xf32, #tpu.memory_space<vmem>>, vector<128x32xf32>
    %cst_9 = arith.constant dense<0.000000e+00> : vector<8x128xf32>
    %6 = tpu.matmul %4, %5, %cst_9 {dimension_numbers = #tpu.dot_dimension_numbers<[1], [1], [0], [0], [0, 0, 1, 0], [], []>} : vector<8x32xf32>, vector<128x32xf32>, vector<8x128xf32> -> vector<8x128xf32>
    %c0_10 = arith.constant 0 : index
    %c0_11 = arith.constant 0 : index
    %7 = vector.load %arg4[%c0_10, %c0_11] : memref<8x128xf32, #tpu.memory_space<vmem>>, vector<8x128xf32>
    tpu.vector_store %arg4[%c0_10, %c0_11], %6 {strides = array<i32>} : memref<8x128xf32, #tpu.memory_space<vmem>>, vector<8x128xf32>,
    return
  }
  func.func @transform_0(%arg0: i32) -> (i32, i32) {
    %c0_i32 = arith.constant 0 : i32
    %c0_i32_0 = arith.constant 0 : i32
    return %arg0, %c0_i32 : i32, i32
  }
  func.func @transform_1(%arg0: i32) -> (i32, i32) {
    %c0_i32 = arith.constant 0 : i32
    %c0_i32_0 = arith.constant 0 : i32
    %c0_i32_1 = arith.constant 0 : i32
    return %c0_i32, %c0_i32_0 : i32, i32
  }
  func.func @transform_2(%arg0: i32) -> (i32, i32) {
    %c0_i32 = arith.constant 0 : i32
    %c0_i32_0 = arith.constant 0 : i32
    %c0_i32_1 = arith.constant 0 : i32
    return %c0_i32, %c0_i32_0 : i32, i32
  }
  func.func @transform_3(%arg0: i32) -> (i32, i32) {
    %c0_i32 = arith.constant 0 : i32
    %c0_i32_0 = arith.constant 0 : i32
    return %arg0, %c0_i32 : i32, i32
  }
}

</mosaic_0001>

<bundles_post_ra>
// kernel: simple_linear_model.1
= control target key start
LH: loop header
LB: loop body
LE: loop exit
PB: predicated region body
PF: predicated region fallthrough
CT: control target
= control target key end

     0   :  { %vm20_vm0 = vcmask 130048   ;;  %v376_v1 = vmov 0.0   ;;  %vm377_vm1 = vmmov 0   ;;  %vm106_vm2 = vcmask 261120   ;;  %s510_s0 = inlined_call_operand.vmem [shape: f32[8,16], index: 0, kind: input, shape index: {}]   ;;  %s511_s1 = inlined_call_operand.vmem [shape: f32[32,16], index: 1, kind: input, shape index: {}]   ;;  %s512_s2 = inlined_call_operand.vmem [shape: f32[128,32], index: 2, kind: input, shape index: {}]   ;;  %s513_s3 = inlined_call_operand.hbm [shape: f32[8,128], index: 3, kind: output, shape index: {}]  }
   0x1   :  { %v19_v0 = vld [vmem:[%s511_s1 + $0x18] sm:$0xff]  ;;  %305 = vmatprep.subr.mxu0 %v376_v1  ;;  %313 = vmatprep.mubr.msk.f32.mxu0 %vm377_vm1, %v376_v1  ;;  %v18_v3 = vld [vmem:[%s511_s1 + $0x10] sm:$0xff] }
   0x2   :  { %v124_v2 = vld [vmem:[%s512_s2 + $0x78] sm:$0xff]  ;;  %306 = vmatpush3.xpose.msk.msra.mxu0 %vm20_vm0, %v19_v0  ;;  %316 = vmatprep.subr.mxu1 %v376_v1  ;;  %v123_v4 = vld [vmem:[%s512_s2 + $0x70] sm:$0xff] }
   0x3   :  { %307 = vmatprep.subr.mxu0 %v376_v1  ;;  %317 = vmatpush3.xpose.msk.msra.mxu1 %vm106_vm2, %v124_v2 }
   0x4   :  { %318 = vmatprep.subr.mxu1 %v376_v1  ;;  %348 = vmatprep.mubr.msk.f32.mxu1 %vm377_vm1, %v376_v1 }
   0x6   :  { %308 = vmatpush3.xpose.msk.msra.mxu0 %vm20_vm0, %v18_v3 }
   0x7   :  { %8 = vsyncpa [#allocation4], 0  ;;  %309 = vmatprep.subr.mxu0 %v376_v1  ;;  %v17_v5 = vld [vmem:[%s511_s1 + $0x8] sm:$0xff]  ;;  %319 = vmatpush3.xpose.msk.msra.mxu1 %vm106_vm2, %v123_v4  ;;  %v16_v7 = vld [vmem:[%s511_s1] sm:$0xff]  ;;  %s378_s25 = smov [#allocation3]  }
   0x8   :  { %320 = vmatprep.subr.mxu1 %v376_v1  ;;  %v122_v6 = vld [vmem:[%s512_s2 + $0x68] sm:$0xff]  ;;  %v121_v8 = vld [vmem:[%s512_s2 + $0x60] sm:$0xff]  ;;  %v120_v10 = vld [vmem:[%s512_s2 + $0x58] sm:$0xff]  ;;  %s253_s26 = sshll.u32 %s378_s25, 4  ;;  %s254_s26 = int_to_ptr.vmem [resolvable:$true] %s253_s26 }
   0x9   :  { %v15_v9 = vld [vmem:[%s510_s0] sm:$0xff]  ;;  %v119_v11 = vld [vmem:[%s512_s2 + $0x50] sm:$0xff]  ;;  %v118_v12 = vld [vmem:[%s512_s2 + $0x48] sm:$0xff]  ;;  %s354_s27 = scalar_lea.vmem %s254_s26, 128  ;;  %p359_p1 = scmp.lt.s32.totalorder %s254_s26, %s254_s26 }
   0xa   :  { %310 = vmatpush3.xpose.msk.msra.mxu0 %vm20_vm0, %v17_v5  ;;  %v117_v13 = vld [vmem:[%s512_s2 + $0x40] sm:$0xff]  ;;  %v116_v14 = vld [vmem:[%s512_s2 + $0x38] sm:$0xff]  ;;  %v115_v15 = vld [vmem:[%s512_s2 + $0x30] sm:$0xff]  ;;  %p355_p0 = scmp.ne.s32.totalorder %s254_s26, %s354_s27  ;;  %p360_p2 = scmp.lt.s32.totalorder %s354_s27, %s354_s27 }
   0xb   :  { %311 = vmatprep.subr.mxu0 %v376_v1  ;;  %321 = vmatpush3.xpose.msk.msra.mxu1 %vm106_vm2, %v122_v6  ;;  %v114_v16 = vld [vmem:[%s512_s2 + $0x28] sm:$0xff]  ;;  %v113_v17 = vld [vmem:[%s512_s2 + $0x20] sm:$0xff]  ;;  %v112_v18 = vld [vmem:[%s512_s2 + $0x18] sm:$0xff] }
   0xc   :  { %322 = vmatprep.subr.mxu1 %v376_v1  ;;  %v111_v19 = vld [vmem:[%s512_s2 + $0x10] sm:$0xff]  ;;  %v110_v20 = vld [vmem:[%s512_s2 + $0x8] sm:$0xff]  ;;  %v109_v21 = vld [vmem:[%s512_s2] sm:$0xff]  ;;  %p361_p3 = por %p360_p2, %p359_p1 }
   0xe   :  { %312 = vmatpush3.xpose.msk.msra.mxu0 %vm20_vm0, %v16_v7  ;;  %p362_p4 = pnand %p361_p3, %p355_p0 }
   0xf   :  { %323 = vmatpush3.xpose.msk.msra.mxu1 %vm106_vm2, %v121_v8 }
  0x10   :  { %324 = vmatprep.subr.mxu1 %v376_v1 }
  0x11   :  { %314 = vmatmul.mubr.msk.f32.vlgmr.msra.gmra.mxu0 %vm20_vm0, %v15_v9 }
  0x13   :  { %325 = vmatpush3.xpose.msk.msra.mxu1 %vm106_vm2, %v120_v10 }
  0x14   :  { %326 = vmatprep.subr.mxu1 %v376_v1 }
  0x17   :  { %327 = vmatpush3.xpose.msk.msra.mxu1 %vm106_vm2, %v119_v11 }
  0x18   :  { %328 = vmatprep.subr.mxu1 %v376_v1 }
  0x1b   :  { %329 = vmatpush3.xpose.msk.msra.mxu1 %vm106_vm2, %v118_v12 }
  0x1c   :  { %330 = vmatprep.subr.mxu1 %v376_v1 }
  0x1f   :  { %331 = vmatpush3.xpose.msk.msra.mxu1 %vm106_vm2, %v117_v13 }
  0x20   :  { %332 = vmatprep.subr.mxu1 %v376_v1 }
  0x23   :  { %333 = vmatpush3.xpose.msk.msra.mxu1 %vm106_vm2, %v116_v14 }
  0x24   :  { %334 = vmatprep.subr.mxu1 %v376_v1 }
  0x27   :  { %335 = vmatpush3.xpose.msk.msra.mxu1 %vm106_vm2, %v115_v15 }
  0x28   :  { %336 = vmatprep.subr.mxu1 %v376_v1 }
  0x2b   :  { %337 = vmatpush3.xpose.msk.msra.mxu1 %vm106_vm2, %v114_v16 }
  0x2c   :  { %338 = vmatprep.subr.mxu1 %v376_v1 }
  0x2f   :  { %339 = vmatpush3.xpose.msk.msra.mxu1 %vm106_vm2, %v113_v17 }
  0x30   :  { %340 = vmatprep.subr.mxu1 %v376_v1 }
  0x33   :  { %341 = vmatpush3.xpose.msk.msra.mxu1 %vm106_vm2, %v112_v18 }
  0x34   :  { %342 = vmatprep.subr.mxu1 %v376_v1 }
  0x37   :  { %343 = vmatpush3.xpose.msk.msra.mxu1 %vm106_vm2, %v111_v19 }
  0x38   :  { %344 = vmatprep.subr.mxu1 %v376_v1 }
  0x3b   :  { %345 = vmatpush3.xpose.msk.msra.mxu1 %vm106_vm2, %v110_v20 }
  0x3c   :  { %346 = vmatprep.subr.mxu1 %v376_v1 }
  0x3f   :  { %347 = vmatpush3.xpose.msk.msra.mxu1 %vm106_vm2, %v109_v21 }
  0xd1   :  { %v102_v22 = vpop.f32.mrf.mxu0 }
  0xd2   :  { %107 = vst.msk [vmem:[#allocation2] sm:$0xff] %vm106_vm2, %v102_v22 }
  0xd3   :  { %v315_v23 = vpop.f32.mrf.mxu0 }
  0xd9   :  { %v108_v24 = vld [vmem:[#allocation2] sm:$0xff] }
  0xda   :  { %349 = vmatmul.mubr.msk.f32.vlgmr.msra.gmra.mxu1 %vm106_vm2, %v108_v24 }
 0x19a   :  { %v242_v25 = vpop.f32.mrf.mxu1 }
 0x19b   :  { %246 = vst [vmem:[#allocation3] sm:$0xff] %v242_v25 }
 0x19c   :  { %v350_v26 = vpop.f32.mrf.mxu1 }
 0x19d   :  { %365 = shalt.err (!%p362_p4)
}
 0x19e   :  { %256 = dma.vmem_to_hbm [thread:$0]  %s254_s26, 128, %s513_s3, [#allocation4]  }
 0x19f   :  { %374 = dma.done.wait [#allocation4], 128  }
 0x1a0   :  { %375 = vsyncadd [#allocation4], 4294967168 }
 0x1a1   :  { %260 = vsyncpa [#allocation4], 1 }

</bundles_post_ra>
